<compile_context>
chip_gen: v7x
topology: tpu7x:2x2x1
jax: 0.10.0
libtpu: 0.0.40
codegen_flags: <defaults>
</compile_context>

<pallas_src>
import functools

import jax
import jax.numpy as jnp
from jax.experimental import pallas as pl
from jax.experimental.pallas import tpu as pltpu

NEG_SLOPE = 0.2


def _leaky(v):
    return jnp.where(v > 0, v, jnp.asarray(NEG_SLOPE, v.dtype) * v)


def _round_up(x, m):
    return (x + m - 1) // m * m


def _pad_amounts(kernel_size, dilation, causal):
    if kernel_size == 3:
        pad_dilation = dilation
    elif kernel_size == 5:
        pad_dilation = 2 * dilation
    elif kernel_size == 7:
        pad_dilation = 3 * dilation
    else:
        raise ValueError("kernel_size must be 3, 5 or 7")
    return (2 * pad_dilation, 0) if causal else (pad_dilation, pad_dilation)


def resnet_block_kernel(xt_ref, w1_ref, b1_ref, w2_ref, b2_ref, ws_ref, bs_ref,
                        o_ref, *, ksize, dilation, pad_l, t_tile):
    # shortcut: 1x1 conv on the unactivated interior rows of the halo'd tile
    x_in = xt_ref[0, 0, pad_l:pad_l + t_tile, :]
    sc = jnp.dot(x_in, ws_ref[...], preferred_element_type=jnp.float32) + bs_ref[...]

    # block branch: LeakyReLU commutes with reflection padding, so it is
    # applied per-tap on ref slices (no full padded intermediate in VMEM).
    acc = b1_ref[...]                      # (1, C) f32, broadcasts over rows
    for k in range(ksize):                 # static unroll over conv taps
        off = k * dilation
        h = _leaky(xt_ref[0, 0, off:off + t_tile, :])
        acc = acc + jnp.dot(h, w1_ref[k], preferred_element_type=jnp.float32)

    y = _leaky(acc).astype(w2_ref.dtype)
    # alpha is pre-folded into w2/b2, so the residual needs no extra scale
    y = jnp.dot(y, w2_ref[...], preferred_element_type=jnp.float32) + b2_ref[...]

    o_ref[0] = (sc + y).astype(o_ref.dtype)


def resnet_block_ntc(x_ntc, params, *, kernel_size=3, dilation=1, causal=False,
                     t_tile=1024, compute_dtype=None):
    """Channels-last entry point: x_ntc is (B, T, C)."""
    B, T, C = x_ntc.shape
    pad_l, pad_r = _pad_amounts(kernel_size, dilation, causal)
    halo = pad_l + pad_r                     # == (kernel_size - 1) * dilation
    cdtype = x_ntc.dtype if compute_dtype is None else compute_dtype

    # time tile: multiple of 16 satisfies f32 (8,·) and bf16 (16,·) sublane tiling
    t_tile = max(16, min(_round_up(t_tile, 16), _round_up(T, 16)))
    nT = pl.cdiv(T, t_tile)
    tile_len = t_tile + halo

    # Reflection pad + halo windowing folded into ONE gather:
    # tile t, local row j covers padded-domain row g = t*t_tile + j, which maps
    # to source row reflect(g - pad_l) of the unpadded signal.
    g = jnp.arange(nT)[:, None] * t_tile + jnp.arange(tile_len)[None, :]
    i = g - pad_l
    src = jnp.where(i < 0, -i, jnp.where(i > T - 1, 2 * (T - 1) - i, i))
    src = jnp.clip(src, 0, T - 1)                       # tail-tile overrun rows
    x_tiles = jnp.take(x_ntc, src, axis=1).astype(cdtype)  # (B, nT, tile_len, C)

    # torch Conv1d weight (out, in, k) -> (in, out) per tap for x @ W; fold alpha
    alpha = params["alpha"].reshape(C).astype(jnp.float32)
    w1 = jnp.transpose(params["w1"], (2, 1, 0)).astype(cdtype)           # (K,Cin,Cout)
    w2 = (jnp.transpose(params["w2"][:, :, 0]) * alpha[None, :]).astype(cdtype)
    ws = jnp.transpose(params["ws"][:, :, 0]).astype(cdtype)
    b1 = params["b1"].reshape(1, C).astype(jnp.float32)
    b2 = (params["b2"] * alpha).reshape(1, C).astype(jnp.float32)
    bs = params["bs"].reshape(1, C).astype(jnp.float32)

    kern = functools.partial(resnet_block_kernel, ksize=kernel_size,
                             dilation=dilation, pad_l=pad_l, t_tile=t_tile)
    out = pl.pallas_call(
        kern,
        out_shape=jax.ShapeDtypeStruct((B, nT * t_tile, C), x_ntc.dtype),
        grid_spec=pltpu.PrefetchScalarGridSpec(
            num_scalar_prefetch=0,
            grid=(B, nT),
            in_specs=[
                pl.BlockSpec((1, 1, tile_len, C), lambda b, t: (b, t, 0, 0)),  # x tiles
                pl.BlockSpec((kernel_size, C, C), lambda b, t: (0, 0, 0)),     # w1
                pl.BlockSpec((1, C), lambda b, t: (0, 0)),                     # b1
                pl.BlockSpec((C, C), lambda b, t: (0, 0)),                     # w2*alpha
                pl.BlockSpec((1, C), lambda b, t: (0, 0)),                     # b2*alpha
                pl.BlockSpec((C, C), lambda b, t: (0, 0)),                     # ws
                pl.BlockSpec((1, C), lambda b, t: (0, 0)),                     # bs
            ],
            out_specs=pl.BlockSpec((1, t_tile, C), lambda b, t: (b, t, 0)),
        ),
        compiler_params=pltpu.CompilerParams(
            dimension_semantics=("parallel", "parallel")),
    )(x_tiles, w1, b1, w2, b2, ws, bs)
    return out[:, :T, :]


def resnet_block(x_ncl, params, **kw):
    """PyTorch-layout entry point: x_ncl is (B, C, T) like nn.Conv1d expects.

    TODO(synk): when chaining several ResnetBlocks, keep the model channels-last
    and call resnet_block_ntc directly so the NCL<->NTC transposes amortize
    over the whole stack instead of being paid per block.
    """
    out = resnet_block_ntc(jnp.transpose(x_ncl, (0, 2, 1)), params, **kw)
    return jnp.transpose(out, (0, 2, 1))


def resnet_block_ref(x_ncl, params, *, kernel_size=3, dilation=1, causal=False):
    """Pure-JAX reference mirroring the PyTorch module."""
    B, C, T = x_ncl.shape
    pad_l, pad_r = _pad_amounts(kernel_size, dilation, causal)

    def conv1d(x, w, b, dil):  # x (B,C,T), w (O,I,K), b (O,)
        K = w.shape[2]
        To = x.shape[2] - dil * (K - 1)
        out = jnp.zeros((B, w.shape[0], To), x.dtype)
        for k in range(K):
            out = out + jnp.einsum("bit,oi->bot",
                                   x[:, :, k * dil:k * dil + To], w[:, :, k])
        return out + b[None, :, None]

    leaky = lambda v: jnp.where(v > 0, v, NEG_SLOPE * v)
    h = leaky(x_ncl)
    h = jnp.pad(h, ((0, 0), (0, 0), (pad_l, pad_r)), mode="reflect")
    h = conv1d(h, params["w1"], params["b1"], dilation)
    h = leaky(h)
    h = conv1d(h, params["w2"], params["b2"], 1)
    sc = conv1d(x_ncl, params["ws"], params["bs"], 1)
    return sc + h * params["alpha"][None, :, :]


if __name__ == "__main__":
    B, C, T, K = 2, 4, 64, 3
    key = jax.random.PRNGKey(0)
    ks = jax.random.split(key, 8)
    x = jax.random.normal(ks[0], (B, C, T), jnp.float32)
    params = {
        # torch Conv1d weight shapes: (out, in, kernel)
        "w1": jax.random.normal(ks[1], (C, C, K), jnp.float32) * 0.3,
        "b1": jax.random.normal(ks[2], (C,), jnp.float32) * 0.1,
        "w2": jax.random.normal(ks[3], (C, C, 1), jnp.float32) * 0.3,
        "b2": jax.random.normal(ks[4], (C,), jnp.float32) * 0.1,
        "ws": jax.random.normal(ks[5], (C, C, 1), jnp.float32) * 0.3,
        "bs": jax.random.normal(ks[6], (C,), jnp.float32) * 0.1,
        # torch __init__ fills alpha with 0 (which zeroes the block branch);
        # use a deterministic nonzero value so the block path is exercised.
        "alpha": jax.random.normal(ks[7], (C, 1), jnp.float32) * 0.5,
    }

    # f32, non-causal, multi-tile path (t_tile=16 -> 4 time tiles + halo)
    out = jax.block_until_ready(
        resnet_block(x, params, kernel_size=K, dilation=1, causal=False, t_tile=16))
    ref = resnet_block_ref(x, params, kernel_size=K, dilation=1, causal=False)
    assert out.shape == (B, C, T)
    assert jnp.allclose(out, ref, rtol=1e-4, atol=1e-4), "f32 mismatch vs reference"

    # causal (asymmetric reflection pad) with dilation
    out_c = jax.block_until_ready(
        resnet_block(x, params, kernel_size=K, dilation=2, causal=True, t_tile=16))
    ref_c = resnet_block_ref(x, params, kernel_size=K, dilation=2, causal=True)
    assert jnp.allclose(out_c, ref_c, rtol=1e-4, atol=1e-4), "causal mismatch"

    # bf16 compute path (MXU bf16, f32 accumulation) vs f32 reference
    out_bf = jax.block_until_ready(
        resnet_block(x, params, kernel_size=K, dilation=1, causal=False,
                     t_tile=16, compute_dtype=jnp.bfloat16))
    assert jnp.allclose(out_bf, ref, rtol=5e-2, atol=5e-2), "bf16 mismatch"

    print("KERNEL_OK")
</pallas_src>

<mosaic_0001>
module attributes {stable_mosaic.version = 11 : i64} {
  func.func @resnet_block_kernel(%arg0: i32, %arg1: i32, %arg2: memref<1x1x18x4xf32, #tpu.memory_space<vmem>>, %arg3: memref<3x4x4xf32, #tpu.memory_space<vmem>>, %arg4: memref<1x4xf32, #tpu.memory_space<vmem>>, %arg5: memref<4x4xf32, #tpu.memory_space<vmem>>, %arg6: memref<1x4xf32, #tpu.memory_space<vmem>>, %arg7: memref<4x4xf32, #tpu.memory_space<vmem>>, %arg8: memref<1x4xf32, #tpu.memory_space<vmem>>, %arg9: memref<1x16x4xf32, #tpu.memory_space<vmem>>) attributes {dimension_semantics = [#tpu.dimension_semantics<parallel>, #tpu.dimension_semantics<parallel>], iteration_bounds = array<i64: 2, 4>, scalar_prefetch = 0 : i64, scratch_operands = 0 : i64, tpu.core_type = #tpu.core_type<tc>, window_params = [{transform_indices = @transform_0, window_bounds = array<i64: 1, 1, 18, 4>}, {pipeline_mode = #tpu.pipeline_mode<synchronous>, transform_indices = @transform_1, window_bounds = array<i64: 3, 4, 4>}, {pipeline_mode = #tpu.pipeline_mode<synchronous>, transform_indices = @transform_2, window_bounds = array<i64: 1, 4>}, {pipeline_mode = #tpu.pipeline_mode<synchronous>, transform_indices = @transform_3, window_bounds = array<i64: 4, 4>}, {pipeline_mode = #tpu.pipeline_mode<synchronous>, transform_indices = @transform_4, window_bounds = array<i64: 1, 4>}, {pipeline_mode = #tpu.pipeline_mode<synchronous>, transform_indices = @transform_5, window_bounds = array<i64: 4, 4>}, {pipeline_mode = #tpu.pipeline_mode<synchronous>, transform_indices = @transform_6, window_bounds = array<i64: 1, 4>}, {transform_indices = @transform_7, window_bounds = array<i64: 1, 16, 4>}]} {
    %c0 = arith.constant 0 : index
    %c0_0 = arith.constant 0 : index
    %c1 = arith.constant 1 : index
    %c0_1 = arith.constant 0 : index
    %0 = vector.load %arg2[%c0, %c0_0, %c1, %c0_1] : memref<1x1x18x4xf32, #tpu.memory_space<vmem>>, vector<1x1x16x4xf32>
    %1 = vector.shape_cast %0 : vector<1x1x16x4xf32> to vector<16x4xf32>
    %c0_2 = arith.constant 0 : index
    %c0_3 = arith.constant 0 : index
    %2 = vector.load %arg7[%c0_2, %c0_3] : memref<4x4xf32, #tpu.memory_space<vmem>>, vector<4x4xf32>
    %cst = arith.constant dense<0.000000e+00> : vector<16x4xf32>
    %3 = tpu.matmul %1, %2, %cst {dimension_numbers = #tpu.dot_dimension_numbers<[1], [0], [0], [1], [0, 0, 1, 1], [], []>} : vector<16x4xf32>, vector<4x4xf32>, vector<16x4xf32> -> vector<16x4xf32>
    %c0_4 = arith.constant 0 : index
    %c0_5 = arith.constant 0 : index
    %4 = vector.load %arg8[%c0_4, %c0_5] : memref<1x4xf32, #tpu.memory_space<vmem>>, vector<1x4xf32>
    %5 = vector.broadcast %4 : vector<1x4xf32> to vector<16x4xf32>
    %6 = arith.addf %3, %5 : vector<16x4xf32>
    %c0_6 = arith.constant 0 : index
    %c0_7 = arith.constant 0 : index
    %7 = vector.load %arg4[%c0_6, %c0_7] : memref<1x4xf32, #tpu.memory_space<vmem>>, vector<1x4xf32>
    %c0_8 = arith.constant 0 : index
    %c0_9 = arith.constant 0 : index
    %c0_10 = arith.constant 0 : index
    %c0_11 = arith.constant 0 : index
    %8 = vector.load %arg2[%c0_8, %c0_9, %c0_10, %c0_11] : memref<1x1x18x4xf32, #tpu.memory_space<vmem>>, vector<1x1x16x4xf32>
    %9 = vector.shape_cast %8 : vector<1x1x16x4xf32> to vector<16x4xf32>
    %cst_12 = arith.constant 0.000000e+00 : f32
    %10 = vector.broadcast %cst_12 : f32 to vector<16x4xf32>
    %11 = arith.cmpf ogt, %9, %10 : vector<16x4xf32>
    %cst_13 = arith.constant 2.000000e-01 : f32
    %12 = vector.broadcast %cst_13 : f32 to vector<16x4xf32>
    %13 = arith.mulf %12, %9 : vector<16x4xf32>
    %14 = arith.select %11, %9, %13 : vector<16x4xi1>, vector<16x4xf32>
    %c0_14 = arith.constant 0 : index
    %c0_15 = arith.constant 0 : index
    %c0_16 = arith.constant 0 : index
    %15 = vector.load %arg3[%c0_14, %c0_15, %c0_16] : memref<3x4x4xf32, #tpu.memory_space<vmem>>, vector<1x4x4xf32>
    %16 = vector.shape_cast %15 : vector<1x4x4xf32> to vector<4x4xf32>
    %cst_17 = arith.constant dense<0.000000e+00> : vector<16x4xf32>
    %17 = tpu.matmul %14, %16, %cst_17 {dimension_numbers = #tpu.dot_dimension_numbers<[1], [0], [0], [1], [0, 0, 1, 1], [], []>} : vector<16x4xf32>, vector<4x4xf32>, vector<16x4xf32> -> vector<16x4xf32>
    %18 = vector.broadcast %7 : vector<1x4xf32> to vector<16x4xf32>
    %19 = arith.addf %18, %17 : vector<16x4xf32>
    %c0_18 = arith.constant 0 : index
    %c0_19 = arith.constant 0 : index
    %c1_20 = arith.constant 1 : index
    %c0_21 = arith.constant 0 : index
    %20 = vector.load %arg2[%c0_18, %c0_19, %c1_20, %c0_21] : memref<1x1x18x4xf32, #tpu.memory_space<vmem>>, vector<1x1x16x4xf32>
    %21 = vector.shape_cast %20 : vector<1x1x16x4xf32> to vector<16x4xf32>
    %cst_22 = arith.constant 0.000000e+00 : f32
    %22 = vector.broadcast %cst_22 : f32 to vector<16x4xf32>
    %23 = arith.cmpf ogt, %21, %22 : vector<16x4xf32>
    %cst_23 = arith.constant 2.000000e-01 : f32
    %24 = vector.broadcast %cst_23 : f32 to vector<16x4xf32>
    %25 = arith.mulf %24, %21 : vector<16x4xf32>
    %26 = arith.select %23, %21, %25 : vector<16x4xi1>, vector<16x4xf32>
    %c1_24 = arith.constant 1 : index
    %c0_25 = arith.constant 0 : index
    %c0_26 = arith.constant 0 : index
    %27 = vector.load %arg3[%c1_24, %c0_25, %c0_26] : memref<3x4x4xf32, #tpu.memory_space<vmem>>, vector<1x4x4xf32>
    %28 = vector.shape_cast %27 : vector<1x4x4xf32> to vector<4x4xf32>
    %cst_27 = arith.constant dense<0.000000e+00> : vector<16x4xf32>
    %29 = tpu.matmul %26, %28, %cst_27 {dimension_numbers = #tpu.dot_dimension_numbers<[1], [0], [0], [1], [0, 0, 1, 1], [], []>} : vector<16x4xf32>, vector<4x4xf32>, vector<16x4xf32> -> vector<16x4xf32>
    %30 = arith.addf %19, %29 : vector<16x4xf32>
    %c0_28 = arith.constant 0 : index
    %c0_29 = arith.constant 0 : index
    %c2 = arith.constant 2 : index
    %c0_30 = arith.constant 0 : index
    %31 = vector.load %arg2[%c0_28, %c0_29, %c2, %c0_30] : memref<1x1x18x4xf32, #tpu.memory_space<vmem>>, vector<1x1x16x4xf32>
    %32 = vector.shape_cast %31 : vector<1x1x16x4xf32> to vector<16x4xf32>
    %cst_31 = arith.constant 0.000000e+00 : f32
    %33 = vector.broadcast %cst_31 : f32 to vector<16x4xf32>
    %34 = arith.cmpf ogt, %32, %33 : vector<16x4xf32>
    %cst_32 = arith.constant 2.000000e-01 : f32
    %35 = vector.broadcast %cst_32 : f32 to vector<16x4xf32>
    %36 = arith.mulf %35, %32 : vector<16x4xf32>
    %37 = arith.select %34, %32, %36 : vector<16x4xi1>, vector<16x4xf32>
    %c2_33 = arith.constant 2 : index
    %c0_34 = arith.constant 0 : index
    %c0_35 = arith.constant 0 : index
    %38 = vector.load %arg3[%c2_33, %c0_34, %c0_35] : memref<3x4x4xf32, #tpu.memory_space<vmem>>, vector<1x4x4xf32>
    %39 = vector.shape_cast %38 : vector<1x4x4xf32> to vector<4x4xf32>
    %cst_36 = arith.constant dense<0.000000e+00> : vector<16x4xf32>
    %40 = tpu.matmul %37, %39, %cst_36 {dimension_numbers = #tpu.dot_dimension_numbers<[1], [0], [0], [1], [0, 0, 1, 1], [], []>} : vector<16x4xf32>, vector<4x4xf32>, vector<16x4xf32> -> vector<16x4xf32>
    %41 = arith.addf %30, %40 : vector<16x4xf32>
    %cst_37 = arith.constant 0.000000e+00 : f32
    %42 = vector.broadcast %cst_37 : f32 to vector<16x4xf32>
    %43 = arith.cmpf ogt, %41, %42 : vector<16x4xf32>
    %cst_38 = arith.constant 2.000000e-01 : f32
    %44 = vector.broadcast %cst_38 : f32 to vector<16x4xf32>
    %45 = arith.mulf %44, %41 : vector<16x4xf32>
    %46 = arith.select %43, %41, %45 : vector<16x4xi1>, vector<16x4xf32>
    %c0_39 = arith.constant 0 : index
    %c0_40 = arith.constant 0 : index
    %47 = vector.load %arg5[%c0_39, %c0_40] : memref<4x4xf32, #tpu.memory_space<vmem>>, vector<4x4xf32>
    %cst_41 = arith.constant dense<0.000000e+00> : vector<16x4xf32>
    %48 = tpu.matmul %46, %47, %cst_41 {dimension_numbers = #tpu.dot_dimension_numbers<[1], [0], [0], [1], [0, 0, 1, 1], [], []>} : vector<16x4xf32>, vector<4x4xf32>, vector<16x4xf32> -> vector<16x4xf32>
    %c0_42 = arith.constant 0 : index
    %c0_43 = arith.constant 0 : index
    %49 = vector.load %arg6[%c0_42, %c0_43] : memref<1x4xf32, #tpu.memory_space<vmem>>, vector<1x4xf32>
    %50 = vector.broadcast %49 : vector<1x4xf32> to vector<16x4xf32>
    %51 = arith.addf %48, %50 : vector<16x4xf32>
    %52 = arith.addf %6, %51 : vector<16x4xf32>
    %c0_44 = arith.constant 0 : index
    %c0_45 = arith.constant 0 : index
    %c0_46 = arith.constant 0 : index
    %53 = vector.load %arg9[%c0_44, %c0_45, %c0_46] : memref<1x16x4xf32, #tpu.memory_space<vmem>>, vector<1x16x4xf32>
    %54 = vector.shape_cast %53 : vector<1x16x4xf32> to vector<16x4xf32>
    %55 = vector.shape_cast %52 : vector<16x4xf32> to vector<1x16x4xf32>
    tpu.vector_store %arg9[%c0_44, %c0_45, %c0_46], %55 {strides = array<i32>} : memref<1x16x4xf32, #tpu.memory_space<vmem>>, vector<1x16x4xf32>,
    return
  }
  func.func @transform_0(%arg0: i32, %arg1: i32) -> (i32, i32, i32, i32) {
    %c0_i32 = arith.constant 0 : i32
    %c0_i32_0 = arith.constant 0 : i32
    %c0_i32_1 = arith.constant 0 : i32
    return %arg0, %arg1, %c0_i32, %c0_i32_0 : i32, i32, i32, i32
  }
  func.func @transform_1(%arg0: i32, %arg1: i32) -> (i32, i32, i32) {
    %c0_i32 = arith.constant 0 : i32
    %c0_i32_0 = arith.constant 0 : i32
    %c0_i32_1 = arith.constant 0 : i32
    %c0_i32_2 = arith.constant 0 : i32
    return %c0_i32, %c0_i32_0, %c0_i32_1 : i32, i32, i32
  }
  func.func @transform_2(%arg0: i32, %arg1: i32) -> (i32, i32) {
    %c0_i32 = arith.constant 0 : i32
    %c0_i32_0 = arith.constant 0 : i32
    %c0_i32_1 = arith.constant 0 : i32
    return %c0_i32, %c0_i32_0 : i32, i32
  }
  func.func @transform_3(%arg0: i32, %arg1: i32) -> (i32, i32) {
    %c0_i32 = arith.constant 0 : i32
    %c0_i32_0 = arith.constant 0 : i32
    %c0_i32_1 = arith.constant 0 : i32
    return %c0_i32, %c0_i32_0 : i32, i32
  }
  func.func @transform_4(%arg0: i32, %arg1: i32) -> (i32, i32) {
    %c0_i32 = arith.constant 0 : i32
    %c0_i32_0 = arith.constant 0 : i32
    %c0_i32_1 = arith.constant 0 : i32
    return %c0_i32, %c0_i32_0 : i32, i32
  }
  func.func @transform_5(%arg0: i32, %arg1: i32) -> (i32, i32) {
    %c0_i32 = arith.constant 0 : i32
    %c0_i32_0 = arith.constant 0 : i32
    %c0_i32_1 = arith.constant 0 : i32
    return %c0_i32, %c0_i32_0 : i32, i32
  }
  func.func @transform_6(%arg0: i32, %arg1: i32) -> (i32, i32) {
    %c0_i32 = arith.constant 0 : i32
    %c0_i32_0 = arith.constant 0 : i32
    %c0_i32_1 = arith.constant 0 : i32
    return %c0_i32, %c0_i32_0 : i32, i32
  }
  func.func @transform_7(%arg0: i32, %arg1: i32) -> (i32, i32, i32) {
    %c0_i32 = arith.constant 0 : i32
    %c0_i32_0 = arith.constant 0 : i32
    return %arg0, %arg1, %c0_i32 : i32, i32, i32
  }
}

</mosaic_0001>

<bundles_post_ra>
// kernel: tpu_custom_call.1
= control target key start
LH: loop header
LB: loop body
LE: loop exit
PB: predicated region body
PF: predicated region fallthrough
CT: control target
= control target key end

     0   :  { %s1104_s24 = smov 0   ;;  %s1106_s25 = smov 0   ;;  %s1218_s0 = inlined_call_operand.vmem [shape: f32[2,4,18,4], index: 0, kind: input, shape index: {}]   ;;  %s1219_s1 = inlined_call_operand.vmem [shape: f32[3,4,4], index: 1, kind: input, shape index: {}]   ;;  %s1220_s2 = inlined_call_operand.vmem [shape: f32[1,4], index: 2, kind: input, shape index: {}]   ;;  %s1221_s3 = inlined_call_operand.vmem [shape: f32[4,4], index: 3, kind: input, shape index: {}]   ;;  %s1222_s4 = inlined_call_operand.vmem [shape: f32[1,4], index: 4, kind: input, shape index: {}]   ;;  %s1223_s5 = inlined_call_operand.vmem [shape: f32[4,4], index: 5, kind: input, shape index: {}]   ;;  %s1224_s6 = inlined_call_operand.vmem [shape: f32[1,4], index: 6, kind: input, shape index: {}]   ;;  %s1225_s7 = inlined_call_operand.vmem [shape: f32[2,64,4], index: 7, kind: output, shape index: {}]  }
   0x1   :  { %s1108_s26 = smov 0   ;;  %s1110_s27 = smov 0  }
   0x2   :  { %s1112_s28 = smov 0  }
   0x3 LB: > { %s26_s29 = sadd.s32 1, %s1054_s26  ;;  %s29_s30 = sadd.s32 1, %s1058_s27  ;;  %s1062_s28 = sphi %s1112_s28, %s17_s28   ;;  %s1058_s27 = sphi %s1110_s27, %s1229_s27   ;;  %s1054_s26 = sphi %s1108_s26, %s1228_s26   ;;  %s1050_s25 = sphi %s1106_s25, %s1227_s25   ;;  %s1046_s24 = sphi %s1104_s24, %s1226_s24  }
   0x4   : > { %p27_p0 = scmp.ge.s32.totalorder %s26_s29, 4  ;;  %p903_p1 = scmp.ge.s32.totalorder %s1062_s28, 1 }
   0x5   : > { %p257_p2 = scmp.lt.s32.totalorder %s1062_s28, 9 }
   0x6   : > { %s1231_s29 = smov (%p27_p0, %s26_s29), 0  ;;  %s1233_s30 = smov (!%p27_p0, %s29_s30), %s1058_s27 }
   0x7   : > { %p258_p3 = pnand %p903_p1, %p257_p2  ;;  %p31_p4 = scmp.ge.s32.totalorder %s1233_s30, 2 }
   0x8   : > { %vm333_vm0 = vcmask (!%p258_p3), 1043456   ;;  %v421_v0 = vld [vmem:[%s1219_s1] sm:$0xf] (!%p258_p3)  ;;  %p297_p5 = scmp.lt.s32.totalorder (!%p258_p3), %s1050_s25, 1  ;;  %p299_p6 = scmp.lt.s32.totalorder (!%p258_p3), %s1046_s24, 3  ;;  %vm326_vm1 = vcmask (!%p258_p3), 31744  }
   0x9   : > { %s1235_s30 = smov (%p31_p4, %s1233_s30), 0  ;;  %261 = sbr.rel (%p258_p3) target bundleno = 482 (0x1e2), region = 48 }
   0xa   : > { %950 = vmatprep.subr.msk.mxu1 (!%p258_p3), %vm333_vm0, %v421_v0  ;;  %v916_v1 = vld [vmem:[%s1219_s1 + $0x4] sm:$0xf] (!%p258_p3)  ;;  %v318_v2 = vld [vmem:[%s1223_s5] sm:$0xf] (!%p258_p3)  ;;  %v920_v14 = vld [vmem:[%s1219_s1 + $0x8] sm:$0xf] (!%p258_p3) }
   0xb   : > { %951 = vmatpush3.msk.msra.mxu1 (!%p258_p3), %vm333_vm0, %v421_v0  ;;  %945 = vmatprep.subr.msk.mxu0 (!%p258_p3), %vm333_vm0, %v318_v2  ;;  %v710_v3 = vld [vmem:[%s1221_s3] sm:$0xf] (!%p258_p3)  ;;  %s905_s12 = sshll.u32 (!%p258_p3), %s1046_s24, 1 }
   0xc   : > { %955 = vmatprep.subr.msk.mxu1 (!%p258_p3), %vm333_vm0, %v916_v1  ;;  %946 = vmatpush3.msk.msra.mxu0 (!%p258_p3), %vm333_vm0, %v318_v2  ;;  %v915_v23 = vld [vmem:[%s1220_s2] ss:$0 sm:$0xff] (!%p258_p3)  ;;  %p309_p7 = scmp.lt.s32.totalorder (!%p258_p3), %s905_s12, 7 }
   0xd   : > { %965 = vmatprep.subr.msk.mxu0 (!%p258_p3), %vm333_vm0, %v710_v3  ;;  %v908_v32 = vld [vmem:[%s1224_s6] ss:$0 sm:$0xff] (!%p258_p3) }
   0xe   : > { %v924_v34 = vld [vmem:[%s1222_s4] ss:$0 sm:$0xff] (!%p258_p3) }
  0x10   : > { %s1237_s25 = smov (!%p297_p5, %s1050_s25), 1  ;;  %s1239_s12 = smov (!%p309_p7, %s905_s12), 7 }
  0x11   : > { %s300_s16 = scalar_select %p299_p6, %s1046_s24, 3 }
  0x12   : > { %s983_s17 = smul.u32 12, %s1237_s25  ;;  %s906_s13 = sshll.u32 %s1237_s25, 3 }
  0x13   : > { %s982_s18 = smul.u32 3, %s300_s16  ;;  %s312_s14 = sadd.s32 %s906_s13, %s1239_s12 }
  0x15   : > { %s303_s19 = sadd.s32 %s983_s17, %s982_s18  ;;  %s907_s17 = sshll.u32 %s312_s14, 3 }
  0x16   : > { %s904_s20 = sshll.u32 %s303_s19, 3  ;;  %s314_s24 = scalar_lea.vmem %s1225_s7, %s907_s17 }
  0x17   : > { %s1162_s23 = scalar_lea.vmem %s1218_s0, %s904_s20 }
  0x18   : > { %v413_v4 = vld [vmem:[%s1162_s23] sm:$0xff]  ;;  %v414_v5 = vld [vmem:[%s1162_s23 + $0x8] sm:$0xff] }
  0x19   : > { %v316_v6 = vld [vmem:[%s1162_s23 + $0x1] sm:$0xff]  ;;  %vm415_vm2 = vcmp.gt.f32.partialorder %v413_v4, 0.0  ;;  %v417_v7 = vmul.f32 0.2, %v413_v4  ;;  %vm416_vm3 = vcmp.gt.f32.partialorder %v414_v5, 0.0  ;;  %v317_v10 = vld [vmem:[%s1162_s23 + $0x9] sm:$0xff] }
  0x1a   : > { %v418_v8 = vmul.f32 0.2, %v414_v5  ;;  %947 = vmatprep.mubr.msk.f32.mxu0 %vm326_vm1, %v316_v6  ;;  %vm514_vm4 = vcmp.gt.f32.partialorder %v316_v6, 0.0  ;;  %v516_v9 = vmul.f32 0.2, %v316_v6  ;;  %v608_v15 = vld [vmem:[%s1162_s23 + $0x2] sm:$0xff] }
  0x1b   : > { %v419_v11 = vsel %vm415_vm2, %v413_v4, %v417_v7  ;;  %948 = vmatmul.mubr.msk.f32.vlgmr.msra.gmra.mrb[0].mxu0 %vm326_vm1, %v317_v10  ;;  %v517_v16 = vmul.f32 0.2, %v317_v10  ;;  %vm515_vm5 = vcmp.gt.f32.partialorder %v317_v10, 0.0  ;;  %v612_v17 = vmul.f32 0.2, %v608_v15  ;;  %v609_v20 = vld [vmem:[%s1162_s23 + $0xa] sm:$0xff] }
  0x1c   : > { %v420_v12 = vsel %vm416_vm3, %v414_v5, %v418_v8  ;;  %952 = vmatprep.mubr.msk.f32.mxu1 %vm326_vm1, %v419_v11  ;;  %v518_v13 = vsel %vm514_vm4, %v316_v6, %v516_v9  ;;  %966 = vmatpush3.msk.msra.mxu0 %vm333_vm0, %v710_v3  ;;  %vm610_vm6 = vcmp.gt.f32.partialorder %v608_v15, 0.0  ;;  %v613_v21 = vmul.f32 0.2, %v609_v20 }
  0x1d   : > { %953 = vmatmul.mubr.msk.f32.vlgmr.msra.gmra.mrb[0].mxu1 %vm326_vm1, %v420_v12  ;;  %v519_v18 = vsel %vm515_vm5, %v317_v10, %v517_v16  ;;  %v614_v19 = vsel %vm610_vm6, %v608_v15, %v612_v17  ;;  %vm611_vm7 = vcmp.gt.f32.partialorder %v609_v20, 0.0 }
  0x1e   : > { %956 = vmatpush3.msk.msra.mxu1 %vm333_vm0, %v916_v1  ;;  %957 = vmatprep.mubr.msk.f32.mxu1 %vm326_vm1, %v518_v13  ;;  %v615_v22 = vsel %vm611_vm7, %v609_v20, %v613_v21 }
  0x1f   : > { %960 = vmatprep.subr.msk.mxu1 %vm333_vm0, %v920_v14 }
  0x25   : > { %958 = vmatmul.mubr.msk.f32.vlgmr.msra.gmra.mrb[0].mxu1 %vm326_vm1, %v519_v18 }
  0x26   : > { %961 = vmatpush3.msk.msra.mxu1 %vm333_vm0, %v920_v14  ;;  %962 = vmatprep.mubr.msk.f32.mxu1 %vm326_vm1, %v614_v19 }
  0x2d   : > { %963 = vmatmul.mubr.msk.f32.vlgmr.msra.gmra.mrb[0].mxu1 %vm326_vm1, %v615_v22 }
 0x100   : > { %v964_v24 = vpop.f32.mrb[0].mxu1 }
 0x101   : > { %v974_v25 = vadd.f32 %v964_v24, %v915_v23  ;;  %v693_v26 = vpop.f32.mrb[1].mxu1 }
 0x102   : > { %v975_v27 = vadd.f32 %v915_v23, %v693_v26 }
 0x103   : > { %v707_v28 = vmul.f32 0.2, %v974_v25  ;;  %vm705_vm8 = vcmp.gt.f32.partialorder %v974_v25, 0.0 }
 0x104   : > { %vm704_vm9 = vcmp.gt.f32.partialorder %v975_v27, 0.0  ;;  %v706_v29 = vmul.f32 0.2, %v975_v27 }
 0x105   : > { %v709_v31 = vsel %vm705_vm8, %v974_v25, %v707_v28 }
 0x106   : > { %v708_v30 = vsel %vm704_vm9, %v975_v27, %v706_v29 }
 0x107   : > { %967 = vmatprep.mubr.msk.f32.mxu0 %vm326_vm1, %v708_v30 }
 0x108   : > { %968 = vmatmul.mubr.msk.f32.vlgmr.msra.gmra.mrb[0].mxu0 %vm326_vm1, %v709_v31 }
 0x1db   : > { %v969_v33 = vpop.f32.mrb[0].mxu0 }
 0x1dc   : > { %v970_v35 = vadd.f32 %v969_v33, %v908_v32  ;;  %v793_v36 = vpop.f32.mrb[1].mxu0 }
 0x1dd   : > { %v972_v37 = vadd.f32 %v908_v32, %v793_v36 }
 0x1de   : > { %v971_v38 = vadd.f32 %v970_v35, %v924_v34 }
 0x1df   : > { %v973_v39 = vadd.f32 %v972_v37, %v924_v34 }
 0x1e0   : > { %805 = vst.msk [vmem:[%s314_s24 + $0x8] sm:$0xff] %vm326_vm1, %v971_v38 }
 0x1e1   : > { %804 = vst.msk [vmem:[%s314_s24] sm:$0xff] %vm326_vm1, %v973_v39 }
 0x1e2 PF: > { %s17_s28 = sadd.s32 1, %s1062_s28   ;;  %s1226_s24 = smov %s1054_s26 }
 0x1e3   : > { %p14_p8 = scmp.ge.s32.totalorder %s17_s28, 10   ;;  %s1227_s25 = smov %s1058_s27 }
 0x1e4   : > { %s1228_s26 = smov %s1231_s29  ;;  %s1229_s27 = smov %s1235_s30 }
 0x1e5   :  { %16 = sbr.rel (!%p14_p8) target bundleno = 3 (0x3), region = 80 }

</bundles_post_ra>
